<compile_context>
chip_gen: v7x
topology: tpu7x:2x2x1
jax: 0.10.0
libtpu: 0.0.40
codegen_flags: <defaults>
</compile_context>

<pallas_src>
import functools
import math

import jax
import jax.numpy as jnp
from jax.experimental import pallas as pl
from jax.experimental.pallas import tpu as pltpu

PAD = 128       # lane-dense feature padding (last dim of every buffer)
MAX_ROW_TILE = 512  # row tile for large batches (512*128*4B = 256 KiB/block)


# ----------------------------------------------------------------------------
# Fused Pallas kernel:
#   h = x
#   for each layer of MLP #1: h = act?(h @ W + b)
#   for each layer of MLP #2: h = act?(h @ W + b)
#   o = h
# ----------------------------------------------------------------------------
def _autoencoder_kernel(x_ref, w1_ref, b1_ref, w2_ref, b2_ref, o_ref, *,
                        n1, n2):
    h = x_ref[...]                                         # [TM, 128] f32
    for w_ref, b_ref, n_layers in ((w1_ref, b1_ref, n1),
                                   (w2_ref, b2_ref, n2)):
        for i in range(n_layers):
            w = w_ref[i]                                   # [128, 128]
            b = b_ref[i]                                   # [1, 128]
            h = jnp.dot(h, w, preferred_element_type=jnp.float32) + b
            if i != n_layers - 1:
                h = jnp.maximum(h, 0.0)                    # ReLU
    o_ref[...] = h.astype(o_ref.dtype)


def _pad_rows(n):
    """Return (n_pad, row_tile): sublane-aligned rows + row block size."""
    n8 = max(8, ((n + 7) // 8) * 8)
    if n8 <= MAX_ROW_TILE:
        return n8, n8                      # single block, grid=(1,)
    tm = MAX_ROW_TILE
    n_pad = ((n8 + tm - 1) // tm) * tm
    return n_pad, tm


def _fused_autoencoder_call(x_pad, w1, b1, w2, b2, tm):
    """x_pad: [Np, 128] f32; wX: [L,128,128]; bX: [L,1,128]."""
    n_pad = x_pad.shape[0]
    n1, n2 = int(w1.shape[0]), int(w2.shape[0])
    kernel = functools.partial(_autoencoder_kernel, n1=n1, n2=n2)

    flops = 2 * n_pad * PAD * PAD * (n1 + n2)
    bytes_accessed = 4 * (x_pad.size + w1.size + b1.size + w2.size + b2.size
                          + n_pad * PAD)

    vmem = pl.BlockSpec(memory_space=pltpu.MemorySpace.VMEM)  # whole array in VMEM
    return pl.pallas_call(
        kernel,
        out_shape=jax.ShapeDtypeStruct((n_pad, PAD), jnp.float32),
        grid=(n_pad // tm,),
        in_specs=[
            pl.BlockSpec((tm, PAD), lambda i: (i, 0)),   # x: row-tiled
            vmem, vmem,                                  # first-MLP params
            vmem, vmem,                                  # second-MLP params
        ],
        out_specs=pl.BlockSpec((tm, PAD), lambda i: (i, 0)),
        compiler_params=pltpu.CompilerParams(
            dimension_semantics=("parallel",)),
        cost_estimate=pl.CostEstimate(
            flops=flops, transcendentals=0, bytes_accessed=bytes_accessed),
    )(x_pad, w1, b1, w2, b2)


# ----------------------------------------------------------------------------
# Parameter init (xavier_uniform weights, zero biases).
# Weights stored as [in, out] (transposed vs. PyTorch), zero-padded to
# [128, 128] and stacked to [L, 128, 128]; biases stacked to [L, 1, 128].
# ----------------------------------------------------------------------------
def init_mlp_params_stacked(key, hidden_channels, gain=1.0):
    ws, bs = [], []
    for k in range(1, len(hidden_channels)):
        fin, fout = hidden_channels[k - 1], hidden_channels[k]
        key, sub = jax.random.split(key)
        bound = gain * math.sqrt(6.0 / (fin + fout))
        w = jax.random.uniform(sub, (fin, fout), jnp.float32, -bound, bound)
        ws.append(jnp.zeros((PAD, PAD), jnp.float32).at[:fin, :fout].set(w))
        bs.append(jnp.zeros((1, PAD), jnp.float32))   # nn.init.constant_(bias, 0)
    w_stack = jnp.stack(ws, axis=0)                   # [L, 128, 128]
    b_stack = jnp.stack(bs, axis=0)                   # [L, 1, 128]
    return (w_stack, b_stack), key


# ----------------------------------------------------------------------------
# Autoencoder forward (one fused pallas_call per call, jit'd wrapper)
# ----------------------------------------------------------------------------
def make_autoencoder_forward(hidden_channels):
    hc = tuple(hidden_channels)

    @functools.partial(jax.jit, static_argnames=("sens",))
    def _fwd(x, enc_params, dec_params, sens):
        enc_w, enc_b = enc_params
        dec_w, dec_b = dec_params
        if sens == "physics":                 # encoder then decoder
            w1, b1, w2, b2 = enc_w, enc_b, dec_w, dec_b
            out_dim = hc[0]
        else:                                 # "latent": decoder then encoder
            w1, b1, w2, b2 = dec_w, dec_b, enc_w, enc_b
            out_dim = hc[-1]

        n, f_in = x.shape
        n_pad, tm = _pad_rows(n)
        x_pad = jnp.zeros((n_pad, PAD), jnp.float32).at[:n, :f_in].set(x)
        out = _fused_autoencoder_call(x_pad, w1, b1, w2, b2, tm)
        return out[:n, :out_dim]

    def forward(x, enc_params, dec_params, sens):
        if sens not in ("physics", "latent"):
            print("Specify autoencoder direction")
            return None
        return _fwd(x, enc_params, dec_params, sens)

    return forward


# ----------------------------------------------------------------------------
# Pure-JAX reference (for an in-script sanity check)
# ----------------------------------------------------------------------------
def mlp_ref(x, params, hidden_channels):
    w_stack, b_stack = params
    n_layers = len(hidden_channels) - 1
    for i in range(n_layers):
        fin, fout = hidden_channels[i], hidden_channels[i + 1]
        w = w_stack[i, :fin, :fout]
        b = b_stack[i, 0, :fout]
        x = x @ w + b[None, :]
        if i != n_layers - 1:
            x = jnp.maximum(x, 0.0)
    return x


if __name__ == "__main__":
    # hidden_channels for the encoder MLP; decoder uses the reversed list.
    hidden_channels = [16, 32, 8]
    batch = 8

    key = jax.random.PRNGKey(0)
    enc_params, key = init_mlp_params_stacked(key, hidden_channels)
    dec_params, key = init_mlp_params_stacked(
        key, list(reversed(hidden_channels)))

    forward = make_autoencoder_forward(hidden_channels)

    # 'physics' direction: input in physical space -> dim hidden_channels[0]
    key, sub = jax.random.split(key)
    x_phys = jax.random.normal(sub, (batch, hidden_channels[0]), jnp.float32)
    out_phys = jax.block_until_ready(
        forward(x_phys, enc_params, dec_params, "physics"))

    # 'latent' direction: input in latent space -> dim hidden_channels[-1]
    key, sub = jax.random.split(key)
    x_lat = jax.random.normal(sub, (batch, hidden_channels[-1]), jnp.float32)
    out_lat = jax.block_until_ready(
        forward(x_lat, enc_params, dec_params, "latent"))

    # Sanity-check against pure-JAX reference.
    hc_rev = list(reversed(hidden_channels))
    ref_phys = mlp_ref(
        mlp_ref(x_phys, enc_params, hidden_channels), dec_params, hc_rev)
    ref_lat = mlp_ref(
        mlp_ref(x_lat, dec_params, hc_rev), enc_params, hidden_channels)

    assert out_phys.shape == (batch, hidden_channels[0])
    assert out_lat.shape == (batch, hidden_channels[-1])
    assert jnp.allclose(out_phys, ref_phys, atol=1e-5, rtol=1e-5)
    assert jnp.allclose(out_lat, ref_lat, atol=1e-5, rtol=1e-5)

    print("KERNEL_OK")
</pallas_src>

<mosaic_0001>
module attributes {stable_mosaic.version = 11 : i64} {
  func.func @_autoencoder_kernel(%arg0: i32, %arg1: memref<8x128xf32, #tpu.memory_space<vmem>>, %arg2: memref<2x128x128xf32, #tpu.memory_space<vmem>>, %arg3: memref<2x1x128xf32, #tpu.memory_space<vmem>>, %arg4: memref<2x128x128xf32, #tpu.memory_space<vmem>>, %arg5: memref<2x1x128xf32, #tpu.memory_space<vmem>>, %arg6: memref<8x128xf32, #tpu.memory_space<vmem>>) attributes {dimension_semantics = [#tpu.dimension_semantics<parallel>], iteration_bounds = array<i64: 1>, scalar_prefetch = 0 : i64, scratch_operands = 0 : i64, tpu.core_type = #tpu.core_type<tc>, window_params = [{transform_indices = @transform_0, window_bounds = array<i64: 8, 128>}, {pipeline_mode = #tpu.pipeline_mode<synchronous>, transform_indices = @transform_1, window_bounds = array<i64: 2, 128, 128>}, {pipeline_mode = #tpu.pipeline_mode<synchronous>, transform_indices = @transform_2, window_bounds = array<i64: 2, 1, 128>}, {pipeline_mode = #tpu.pipeline_mode<synchronous>, transform_indices = @transform_3, window_bounds = array<i64: 2, 128, 128>}, {pipeline_mode = #tpu.pipeline_mode<synchronous>, transform_indices = @transform_4, window_bounds = array<i64: 2, 1, 128>}, {transform_indices = @transform_5, window_bounds = array<i64: 8, 128>}]} {
    %c0 = arith.constant 0 : index
    %c0_0 = arith.constant 0 : index
    %0 = vector.load %arg1[%c0, %c0_0] : memref<8x128xf32, #tpu.memory_space<vmem>>, vector<8x128xf32>
    %c0_1 = arith.constant 0 : index
    %c0_2 = arith.constant 0 : index
    %c0_3 = arith.constant 0 : index
    %1 = vector.load %arg2[%c0_1, %c0_2, %c0_3] : memref<2x128x128xf32, #tpu.memory_space<vmem>>, vector<1x128x128xf32>
    %2 = vector.shape_cast %1 : vector<1x128x128xf32> to vector<128x128xf32>
    %c0_4 = arith.constant 0 : index
    %c0_5 = arith.constant 0 : index
    %c0_6 = arith.constant 0 : index
    %3 = vector.load %arg3[%c0_4, %c0_5, %c0_6] : memref<2x1x128xf32, #tpu.memory_space<vmem>>, vector<1x1x128xf32>
    %4 = vector.shape_cast %3 : vector<1x1x128xf32> to vector<1x128xf32>
    %cst = arith.constant dense<0.000000e+00> : vector<8x128xf32>
    %5 = tpu.matmul %0, %2, %cst {dimension_numbers = #tpu.dot_dimension_numbers<[1], [0], [0], [1], [0, 0, 1, 1], [], []>} : vector<8x128xf32>, vector<128x128xf32>, vector<8x128xf32> -> vector<8x128xf32>
    %6 = vector.broadcast %4 : vector<1x128xf32> to vector<8x128xf32>
    %7 = arith.addf %5, %6 : vector<8x128xf32>
    %cst_7 = arith.constant 0.000000e+00 : f32
    %8 = vector.broadcast %cst_7 : f32 to vector<8x128xf32>
    %9 = arith.maximumf %7, %8 : vector<8x128xf32>
    %c1 = arith.constant 1 : index
    %c0_8 = arith.constant 0 : index
    %c0_9 = arith.constant 0 : index
    %10 = vector.load %arg2[%c1, %c0_8, %c0_9] : memref<2x128x128xf32, #tpu.memory_space<vmem>>, vector<1x128x128xf32>
    %11 = vector.shape_cast %10 : vector<1x128x128xf32> to vector<128x128xf32>
    %c1_10 = arith.constant 1 : index
    %c0_11 = arith.constant 0 : index
    %c0_12 = arith.constant 0 : index
    %12 = vector.load %arg3[%c1_10, %c0_11, %c0_12] : memref<2x1x128xf32, #tpu.memory_space<vmem>>, vector<1x1x128xf32>
    %13 = vector.shape_cast %12 : vector<1x1x128xf32> to vector<1x128xf32>
    %cst_13 = arith.constant dense<0.000000e+00> : vector<8x128xf32>
    %14 = tpu.matmul %9, %11, %cst_13 {dimension_numbers = #tpu.dot_dimension_numbers<[1], [0], [0], [1], [0, 0, 1, 1], [], []>} : vector<8x128xf32>, vector<128x128xf32>, vector<8x128xf32> -> vector<8x128xf32>
    %15 = vector.broadcast %13 : vector<1x128xf32> to vector<8x128xf32>
    %16 = arith.addf %14, %15 : vector<8x128xf32>
    %c0_14 = arith.constant 0 : index
    %c0_15 = arith.constant 0 : index
    %c0_16 = arith.constant 0 : index
    %17 = vector.load %arg4[%c0_14, %c0_15, %c0_16] : memref<2x128x128xf32, #tpu.memory_space<vmem>>, vector<1x128x128xf32>
    %18 = vector.shape_cast %17 : vector<1x128x128xf32> to vector<128x128xf32>
    %c0_17 = arith.constant 0 : index
    %c0_18 = arith.constant 0 : index
    %c0_19 = arith.constant 0 : index
    %19 = vector.load %arg5[%c0_17, %c0_18, %c0_19] : memref<2x1x128xf32, #tpu.memory_space<vmem>>, vector<1x1x128xf32>
    %20 = vector.shape_cast %19 : vector<1x1x128xf32> to vector<1x128xf32>
    %cst_20 = arith.constant dense<0.000000e+00> : vector<8x128xf32>
    %21 = tpu.matmul %16, %18, %cst_20 {dimension_numbers = #tpu.dot_dimension_numbers<[1], [0], [0], [1], [0, 0, 1, 1], [], []>} : vector<8x128xf32>, vector<128x128xf32>, vector<8x128xf32> -> vector<8x128xf32>
    %22 = vector.broadcast %20 : vector<1x128xf32> to vector<8x128xf32>
    %23 = arith.addf %21, %22 : vector<8x128xf32>
    %cst_21 = arith.constant 0.000000e+00 : f32
    %24 = vector.broadcast %cst_21 : f32 to vector<8x128xf32>
    %25 = arith.maximumf %23, %24 : vector<8x128xf32>
    %c1_22 = arith.constant 1 : index
    %c0_23 = arith.constant 0 : index
    %c0_24 = arith.constant 0 : index
    %26 = vector.load %arg4[%c1_22, %c0_23, %c0_24] : memref<2x128x128xf32, #tpu.memory_space<vmem>>, vector<1x128x128xf32>
    %27 = vector.shape_cast %26 : vector<1x128x128xf32> to vector<128x128xf32>
    %c1_25 = arith.constant 1 : index
    %c0_26 = arith.constant 0 : index
    %c0_27 = arith.constant 0 : index
    %28 = vector.load %arg5[%c1_25, %c0_26, %c0_27] : memref<2x1x128xf32, #tpu.memory_space<vmem>>, vector<1x1x128xf32>
    %29 = vector.shape_cast %28 : vector<1x1x128xf32> to vector<1x128xf32>
    %cst_28 = arith.constant dense<0.000000e+00> : vector<8x128xf32>
    %30 = tpu.matmul %25, %27, %cst_28 {dimension_numbers = #tpu.dot_dimension_numbers<[1], [0], [0], [1], [0, 0, 1, 1], [], []>} : vector<8x128xf32>, vector<128x128xf32>, vector<8x128xf32> -> vector<8x128xf32>
    %31 = vector.broadcast %29 : vector<1x128xf32> to vector<8x128xf32>
    %32 = arith.addf %30, %31 : vector<8x128xf32>
    %c0_29 = arith.constant 0 : index
    %c0_30 = arith.constant 0 : index
    %33 = vector.load %arg6[%c0_29, %c0_30] : memref<8x128xf32, #tpu.memory_space<vmem>>, vector<8x128xf32>
    tpu.vector_store %arg6[%c0_29, %c0_30], %32 {strides = array<i32>} : memref<8x128xf32, #tpu.memory_space<vmem>>, vector<8x128xf32>,
    return
  }
  func.func @transform_0(%arg0: i32) -> (i32, i32) {
    %c0_i32 = arith.constant 0 : i32
    %c0_i32_0 = arith.constant 0 : i32
    return %arg0, %c0_i32 : i32, i32
  }
  func.func @transform_1(%arg0: i32) -> (i32, i32, i32) {
    %c0_i32 = arith.constant 0 : i32
    %c0_i32_0 = arith.constant 0 : i32
    %c0_i32_1 = arith.constant 0 : i32
    %c0_i32_2 = arith.constant 0 : i32
    return %c0_i32, %c0_i32_0, %c0_i32_1 : i32, i32, i32
  }
  func.func @transform_2(%arg0: i32) -> (i32, i32, i32) {
    %c0_i32 = arith.constant 0 : i32
    %c0_i32_0 = arith.constant 0 : i32
    %c0_i32_1 = arith.constant 0 : i32
    %c0_i32_2 = arith.constant 0 : i32
    return %c0_i32, %c0_i32_0, %c0_i32_1 : i32, i32, i32
  }
  func.func @transform_3(%arg0: i32) -> (i32, i32, i32) {
    %c0_i32 = arith.constant 0 : i32
    %c0_i32_0 = arith.constant 0 : i32
    %c0_i32_1 = arith.constant 0 : i32
    %c0_i32_2 = arith.constant 0 : i32
    return %c0_i32, %c0_i32_0, %c0_i32_1 : i32, i32, i32
  }
  func.func @transform_4(%arg0: i32) -> (i32, i32, i32) {
    %c0_i32 = arith.constant 0 : i32
    %c0_i32_0 = arith.constant 0 : i32
    %c0_i32_1 = arith.constant 0 : i32
    %c0_i32_2 = arith.constant 0 : i32
    return %c0_i32, %c0_i32_0, %c0_i32_1 : i32, i32, i32
  }
  func.func @transform_5(%arg0: i32) -> (i32, i32) {
    %c0_i32 = arith.constant 0 : i32
    %c0_i32_0 = arith.constant 0 : i32
    return %arg0, %c0_i32 : i32, i32
  }
}

</mosaic_0001>

<bundles_post_ra>
// kernel: _fwd.1
= control target key start
LH: loop header
LB: loop body
LE: loop exit
PB: predicated region body
PF: predicated region fallthrough
CT: control target
= control target key end

     0   :  { %10 = vsyncpa [#allocation3], 0  ;;  %s964_s0 = inlined_call_operand.vmem [shape: f32[8,128], index: 0, kind: input, shape index: {}]   ;;  %s965_s1 = inlined_call_operand.hbm [shape: f32[2,128,128], index: 1, kind: input, shape index: {}]   ;;  %s966_s2 = inlined_call_operand.vmem [shape: f32[2,1,128], index: 2, kind: input, shape index: {}]   ;;  %s967_s3 = inlined_call_operand.hbm [shape: f32[2,128,128], index: 3, kind: input, shape index: {}]   ;;  %s968_s4 = inlined_call_operand.vmem [shape: f32[2,1,128], index: 4, kind: input, shape index: {}]   ;;  %s969_s5 = inlined_call_operand.hbm [shape: f32[8,128], index: 5, kind: output, shape index: {}]  }
   0x1   :  { %11 = vsyncpa [#allocation6], 0 }
   0x2   :  { %12 = vsyncpa [#allocation4], 0  ;;  %s835_s18 = smov [#allocation2]   ;;  %s763_s22 = scalar_lea.hbm %s965_s1, 4096 }
   0x3   :  { %s20_s19 = sshll.u32 %s835_s18, 4  ;;  %p764_p0 = scmp.ne.s32.totalorder %s965_s1, %s763_s22  ;;  %s21_s19 = int_to_ptr.vmem [resolvable:$true] %s20_s19 }
   0x4   :  { %p767_p1 = scmp.lt.u32.totalorder %s763_s22, %s965_s1 }
   0x6   :  { %p769_p2 = pnand %p767_p1, %p764_p0 }
   0x8   :  { %772 = shalt.err (!%p769_p2)
}
   0x9   :  { %s773_s27 = scalar_lea.vmem %s21_s19, 4096  ;;  %p778_p4 = scmp.lt.s32.totalorder %s21_s19, %s21_s19 }
   0xa   :  { %p774_p3 = scmp.ne.s32.totalorder %s21_s19, %s773_s27  ;;  %p779_p5 = scmp.lt.s32.totalorder %s773_s27, %s773_s27 }
   0xc   :  { %p780_p6 = por %p779_p5, %p778_p4 }
   0xe   :  { %p781_p7 = pnand %p780_p6, %p774_p3 }
  0x10   :  { %784 = shalt.err (!%p781_p7)
}
  0x11   :  { %s836_s28 = smov 128   ;;  %s837_s29 = smov 8  }
  0x12   :  { %26 = dma.hbm_to_vmem [thread:$0]  %s965_s1, 4096, %s21_s19, [#allocation3], %s836_s28, %s836_s28, %s837_s29  }
  0x13   :  { %s838_s7 = smov [#allocation5]   ;;  %s785_s11 = scalar_lea.hbm %s967_s3, 4096 }
  0x14   :  { %s34_s8 = sshll.u32 %s838_s7, 4  ;;  %p786_p8 = scmp.ne.s32.totalorder %s967_s3, %s785_s11  ;;  %s35_s8 = int_to_ptr.vmem [resolvable:$true] %s34_s8 }
  0x15   :  { %p789_p9 = scmp.lt.u32.totalorder %s785_s11, %s967_s3 }
  0x17   :  { %p791_p10 = pnand %p789_p9, %p786_p8 }
  0x19   :  { %794 = shalt.err (!%p791_p10)
}
  0x1a   :  { %s795_s16 = scalar_lea.vmem %s35_s8, 4096  ;;  %p800_p12 = scmp.lt.s32.totalorder %s35_s8, %s35_s8 }
  0x1b   :  { %p796_p11 = scmp.ne.s32.totalorder %s35_s8, %s795_s16  ;;  %p801_p13 = scmp.lt.s32.totalorder %s795_s16, %s795_s16 }
  0x1d   :  { %p802_p0 = por %p801_p13, %p800_p12 }
  0x1f   :  { %p803_p1 = pnand %p802_p0, %p796_p11 }
  0x21   :  { %806 = shalt.err (!%p803_p1)
}
  0x22   :  { %40 = dma.hbm_to_vmem [thread:$0]  %s967_s3, 4096, %s35_s8, [#allocation6], %s836_s28, %s836_s28, %s837_s29  }
  0x23   :  { %829 = dma.done.wait [#allocation3], 4096  }
  0x24   :  { %830 = vsyncadd [#allocation3], 4294963200 }
  0x25   :  { %831 = dma.done.wait [#allocation6], 4096  }
  0x26   :  { %832 = vsyncadd [#allocation6], 4294963200  ;;  %v839_v0 = vmov 0.0|0.0   ;;  %vm840_vm0 = vmmov 0   ;;  %v841_v1 = vmov 0.0   ;;  %v50_v2 = vld [vmem:[#allocation2] sm:$0xff] }
  0x27   :  { %659 = vmatprep.subr.bf16.mxu0 %v839_v0  ;;  %551 = vmatprep.mubr.msk.f32.mxu0 %vm840_vm0, %v841_v1  ;;  %v51_v3 = vld [vmem:[#allocation2 + $0x8] sm:$0xff]  ;;  %v52_v4 = vld [vmem:[#allocation2 + $0x10] sm:$0xff]  ;;  %v53_v6 = vld [vmem:[#allocation2 + $0x18] sm:$0xff] }
  0x28   :  { %683 = vmatprep.subr.bf16.mxu1 %v839_v0  ;;  %586 = vmatprep.mubr.msk.f32.mxu1 %vm840_vm0, %v841_v1  ;;  %v660_v5 = vpack.c.bf16 %v51_v3, %v50_v2  ;;  %v663_v7 = vpack.c.bf16 %v53_v6, %v52_v4  ;;  %v54_v8 = vld [vmem:[#allocation2 + $0x20] sm:$0xff]  ;;  %v55_v9 = vld [vmem:[#allocation2 + $0x28] sm:$0xff]  ;;  %v147_v12 = vld [vmem:[#allocation2 + $0x90] sm:$0xff] }
  0x29   :  { %v145_v10 = vld [vmem:[#allocation2 + $0x80] sm:$0xff]  ;;  %v146_v11 = vld [vmem:[#allocation2 + $0x88] sm:$0xff]  ;;  %v148_v13 = vld [vmem:[#allocation2 + $0x98] sm:$0xff]  ;;  %v666_v14 = vpack.c.bf16 %v55_v9, %v54_v8 }
  0x2a   :  { %661 = vmatpush3.bf16.msra.mxu0 %v660_v5  ;;  %v684_v15 = vpack.c.bf16 %v146_v11, %v145_v10  ;;  %v56_v16 = vld [vmem:[#allocation2 + $0x30] sm:$0xff]  ;;  %v57_v17 = vld [vmem:[#allocation2 + $0x38] sm:$0xff]  ;;  %v687_v18 = vpack.c.bf16 %v148_v13, %v147_v12  ;;  %v149_v19 = vld [vmem:[#allocation2 + $0xa0] sm:$0xff] }
  0x2b   :  { %662 = vmatprep.subr.bf16.mxu0 %v839_v0  ;;  %v150_v20 = vld [vmem:[#allocation2 + $0xa8] sm:$0xff]  ;;  %v669_v21 = vpack.c.bf16 %v57_v17, %v56_v16  ;;  %v58_v22 = vld [vmem:[#allocation2 + $0x40] sm:$0xff]  ;;  %v151_v25 = vld [vmem:[#allocation2 + $0xb0] sm:$0xff] }
  0x2c   :  { %685 = vmatpush3.bf16.msra.mxu1 %v684_v15  ;;  %v59_v23 = vld [vmem:[#allocation2 + $0x48] sm:$0xff]  ;;  %v690_v24 = vpack.c.bf16 %v150_v20, %v149_v19  ;;  %v152_v26 = vld [vmem:[#allocation2 + $0xb8] sm:$0xff]  ;;  %v60_v28 = vld [vmem:[#allocation2 + $0x50] sm:$0xff] }
  0x2d   :  { %686 = vmatprep.subr.bf16.mxu1 %v839_v0  ;;  %v672_v27 = vpack.c.bf16 %v59_v23, %v58_v22  ;;  %v61_v29 = vld [vmem:[#allocation2 + $0x58] sm:$0xff]  ;;  %v693_v30 = vpack.c.bf16 %v152_v26, %v151_v25  ;;  %v153_v31 = vld [vmem:[#allocation2 + $0xc0] sm:$0xff]  ;;  %v154_v32 = vld [vmem:[#allocation2 + $0xc8] sm:$0xff] }
  0x2e   :  { %664 = vmatpush3.bf16.msra.mxu0 %v663_v7  ;;  %v675_v33 = vpack.c.bf16 %v61_v29, %v60_v28  ;;  %v62_v34 = vld [vmem:[#allocation2 + $0x60] sm:$0xff]  ;;  %v63_v35 = vld [vmem:[#allocation2 + $0x68] sm:$0xff]  ;;  %v696_v36 = vpack.c.bf16 %v154_v32, %v153_v31  ;;  %v155_v37 = vld [vmem:[#allocation2 + $0xd0] sm:$0xff] }
  0x2f   :  { %665 = vmatprep.subr.bf16.mxu0 %v839_v0  ;;  %v156_v38 = vld [vmem:[#allocation2 + $0xd8] sm:$0xff]  ;;  %v678_v39 = vpack.c.bf16 %v63_v35, %v62_v34  ;;  %v64_v40 = vld [vmem:[#allocation2 + $0x70] sm:$0xff]  ;;  %v157_v43 = vld [vmem:[#allocation2 + $0xe0] sm:$0xff] }
  0x30   :  { %688 = vmatpush3.bf16.msra.mxu1 %v687_v18  ;;  %v65_v41 = vld [vmem:[#allocation2 + $0x78] sm:$0xff]  ;;  %v699_v42 = vpack.c.bf16 %v156_v38, %v155_v37  ;;  %v158_v44 = vld [vmem:[#allocation2 + $0xe8] sm:$0xff]  ;;  %v49_v47 = vld [vmem:[%s964_s0] sm:$0xff] }
  0x31   :  { %689 = vmatprep.subr.bf16.mxu1 %v839_v0  ;;  %v681_v45 = vpack.c.bf16 %v65_v41, %v64_v40  ;;  %v702_v46 = vpack.c.bf16 %v158_v44, %v157_v43  ;;  %v159_v48 = vld [vmem:[#allocation2 + $0xf0] sm:$0xff]  ;;  %v160_v49 = vld [vmem:[#allocation2 + $0xf8] sm:$0xff]  ;;  %v239_v51 = vld [vmem:[#allocation5] sm:$0xff] }
  0x32   :  { %667 = vmatpush3.bf16.msra.mxu0 %v666_v14  ;;  %v705_v50 = vpack.c.bf16 %v160_v49, %v159_v48  ;;  %v240_v52 = vld [vmem:[#allocation5 + $0x8] sm:$0xff]  ;;  %v241_v53 = vld [vmem:[#allocation5 + $0x10] sm:$0xff]  ;;  %v242_v55 = vld [vmem:[#allocation5 + $0x18] sm:$0xff] }
  0x33   :  { %668 = vmatprep.subr.bf16.mxu0 %v839_v0  ;;  %v708_v54 = vpack.c.bf16 %v240_v52, %v239_v51  ;;  %v711_v56 = vpack.c.bf16 %v242_v55, %v241_v53  ;;  %v243_v57 = vld [vmem:[#allocation5 + $0x20] sm:$0xff]  ;;  %v244_v58 = vld [vmem:[#allocation5 + $0x28] sm:$0xff]  ;;  %v245_v60 = vld [vmem:[#allocation5 + $0x30] sm:$0xff] }
  0x34   :  { %691 = vmatpush3.bf16.msra.mxu1 %v690_v24  ;;  %v714_v59 = vpack.c.bf16 %v244_v58, %v243_v57  ;;  %v246_v61 = vld [vmem:[#allocation5 + $0x38] sm:$0xff]  ;;  %v247_v63 = vld [vmem:[#allocation5 + $0x40] sm:$0xff]  ;;  %v248_v2 = vld [vmem:[#allocation5 + $0x48] sm:$0xff] }
  0x35   :  { %692 = vmatprep.subr.bf16.mxu1 %v839_v0  ;;  %v717_v62 = vpack.c.bf16 %v246_v61, %v245_v60  ;;  %v720_v3 = vpack.c.bf16 %v248_v2, %v247_v63  ;;  %v249_v4 = vld [vmem:[#allocation5 + $0x50] sm:$0xff]  ;;  %v250_v5 = vld [vmem:[#allocation5 + $0x58] sm:$0xff]  ;;  %v251_v7 = vld [vmem:[#allocation5 + $0x60] sm:$0xff] }
  0x36   :  { %670 = vmatpush3.bf16.msra.mxu0 %v669_v21  ;;  %v723_v6 = vpack.c.bf16 %v250_v5, %v249_v4  ;;  %v252_v8 = vld [vmem:[#allocation5 + $0x68] sm:$0xff]  ;;  %v445_v10 = vld [vmem:[%s966_s2] ss:$0 sm:$0xff]  ;;  %v253_v15 = vld [vmem:[#allocation5 + $0x70] sm:$0xff] }
  0x37   :  { %671 = vmatprep.subr.bf16.mxu0 %v839_v0  ;;  %v726_v9 = vpack.c.bf16 %v252_v8, %v251_v7  ;;  %v254_v16 = vld [vmem:[#allocation5 + $0x78] sm:$0xff]  ;;  %v334_v18 = vld [vmem:[#allocation5 + $0x80] sm:$0xff]  ;;  %v335_v19 = vld [vmem:[#allocation5 + $0x88] sm:$0xff] }
  0x38   :  { %694 = vmatpush3.bf16.msra.mxu1 %v693_v30  ;;  %v729_v17 = vpack.c.bf16 %v254_v16, %v253_v15  ;;  %v336_v20 = vld [vmem:[#allocation5 + $0x90] sm:$0xff]  ;;  %v732_v21 = vpack.c.bf16 %v335_v19, %v334_v18  ;;  %v337_v22 = vld [vmem:[#allocation5 + $0x98] sm:$0xff]  ;;  %v338_v24 = vld [vmem:[#allocation5 + $0xa0] sm:$0xff] }
  0x39   :  { %695 = vmatprep.subr.bf16.mxu1 %v839_v0  ;;  %v735_v23 = vpack.c.bf16 %v337_v22, %v336_v20  ;;  %v339_v25 = vld [vmem:[#allocation5 + $0xa8] sm:$0xff]  ;;  %v342_v29 = vld [vmem:[#allocation5 + $0xc0] sm:$0xff]  ;;  %v344_v32 = vld [vmem:[#allocation5 + $0xd0] sm:$0xff] }
  0x3a   :  { %673 = vmatpush3.bf16.msra.mxu0 %v672_v27  ;;  %v738_v26 = vpack.c.bf16 %v339_v25, %v338_v24  ;;  %v341_v27 = vld [vmem:[#allocation5 + $0xb8] sm:$0xff]  ;;  %v343_v30 = vld [vmem:[#allocation5 + $0xc8] sm:$0xff]  ;;  %v346_v35 = vld [vmem:[#allocation5 + $0xe0] sm:$0xff] }
  0x3b   :  { %674 = vmatprep.subr.bf16.mxu0 %v839_v0  ;;  %v744_v31 = vpack.c.bf16 %v343_v30, %v342_v29  ;;  %v447_v38 = vld [vmem:[%s966_s2 + $0x1] ss:$0 sm:$0xff]  ;;  %v349_v43 = vld [vmem:[#allocation5 + $0xf8] sm:$0xff]  ;;  %s842_s2 = smov [#allocation7]  }
  0x3c   :  { %697 = vmatpush3.bf16.msra.mxu1 %v696_v36  ;;  %v347_v36 = vld [vmem:[#allocation5 + $0xe8] sm:$0xff]  ;;  %v450_v49 = vld [vmem:[%s968_s4 + $0x1] ss:$0 sm:$0xff]  ;;  %s435_s26 = sshll.u32 %s842_s2, 4  ;;  %s436_s26 = int_to_ptr.vmem [resolvable:$true] %s435_s26 }
  0x3d   :  { %698 = vmatprep.subr.bf16.mxu1 %v839_v0  ;;  %v750_v37 = vpack.c.bf16 %v347_v36, %v346_v35  ;;  %s807_s27 = scalar_lea.vmem %s436_s26, 128  ;;  %p812_p3 = scmp.lt.s32.totalorder %s436_s26, %s436_s26 }
  0x3e   :  { %676 = vmatpush3.bf16.msra.mxu0 %v675_v33  ;;  %v345_v33 = vld [vmem:[#allocation5 + $0xd8] sm:$0xff]  ;;  %p808_p2 = scmp.ne.s32.totalorder %s436_s26, %s807_s27  ;;  %p813_p4 = scmp.lt.s32.totalorder %s807_s27, %s807_s27 }
  0x3f   :  { %677 = vmatprep.subr.bf16.mxu0 %v839_v0  ;;  %v747_v34 = vpack.c.bf16 %v345_v33, %v344_v32 }
  0x40   :  { %700 = vmatpush3.bf16.msra.mxu1 %v699_v42  ;;  %v348_v42 = vld [vmem:[#allocation5 + $0xf0] sm:$0xff]  ;;  %p814_p5 = por %p813_p4, %p812_p3 }
  0x41   :  { %701 = vmatprep.subr.bf16.mxu1 %v839_v0  ;;  %v753_v44 = vpack.c.bf16 %v349_v43, %v348_v42 }
  0x42   :  { %679 = vmatpush3.bf16.msra.mxu0 %v678_v39  ;;  %p815_p6 = pnand %p814_p5, %p808_p2 }
  0x43   :  { %680 = vmatprep.subr.bf16.mxu0 %v839_v0 }
  0x44   :  { %703 = vmatpush3.bf16.msra.mxu1 %v702_v46 }
  0x45   :  { %704 = vmatprep.subr.bf16.mxu1 %v839_v0 }
  0x46   :  { %682 = vmatpush3.bf16.msra.mxu0 %v681_v45  ;;  %v448_v45 = vld [vmem:[%s968_s4] ss:$0 sm:$0xff] }
  0x47   :  { %707 = vmatprep.subr.bf16.mxu0 %v839_v0 }
  0x48   :  { %706 = vmatpush3.bf16.msra.mxu1 %v705_v50 }
  0x49   :  { %552 = vmatmul.mubr.f32.vlgmr.msra.gmra.mrb[0].mxu0 %v49_v47  ;;  %731 = vmatprep.subr.bf16.mxu1 %v839_v0 }
  0x4a   :  { %621 = vmatprep.mubr.msk.f32.mxu0 %vm840_vm0, %v841_v1  ;;  %709 = vmatpush3.bf16.msra.mxu0 %v708_v54 }
  0x4b   :  { %710 = vmatprep.subr.bf16.mxu0 %v839_v0 }
  0x4e   :  { %712 = vmatpush3.bf16.msra.mxu0 %v711_v56 }
  0x4f   :  { %713 = vmatprep.subr.bf16.mxu0 %v839_v0 }
  0x52   :  { %715 = vmatpush3.bf16.msra.mxu0 %v714_v59 }
  0x53   :  { %716 = vmatprep.subr.bf16.mxu0 %v839_v0 }
  0x56   :  { %718 = vmatpush3.bf16.msra.mxu0 %v717_v62 }
  0x57   :  { %719 = vmatprep.subr.bf16.mxu0 %v839_v0 }
  0x5a   :  { %721 = vmatpush3.bf16.msra.mxu0 %v720_v3 }
  0x5b   :  { %722 = vmatprep.subr.bf16.mxu0 %v839_v0 }
  0x5e   :  { %724 = vmatpush3.bf16.msra.mxu0 %v723_v6 }
  0x5f   :  { %725 = vmatprep.subr.bf16.mxu0 %v839_v0 }
  0x62   :  { %727 = vmatpush3.bf16.msra.mxu0 %v726_v9 }
  0x63   :  { %728 = vmatprep.subr.bf16.mxu0 %v839_v0 }
  0x66   :  { %730 = vmatpush3.bf16.msra.mxu0 %v729_v17 }
 0x11c   :  { %v139_v11 = vpop.f32.mrb[0].mxu0 }
 0x11d   :  { %v140_v12 = vadd.f32 %v445_v10, %v139_v11  ;;  %v553_v13 = vpop.f32.mrb[1].mxu0 }
 0x11f   :  { %v143_v14 = vmax.f32 %v140_v12, 0.0 }
 0x121   :  { %587 = vmatmul.mubr.f32.vlgmr.msra.gmra.mrb[0].mxu1 %v143_v14 }
 0x122   :  { %656 = vmatprep.mubr.msk.f32.mxu1 %vm840_vm0, %v841_v1  ;;  %733 = vmatpush3.bf16.msra.mxu1 %v732_v21  ;;  %v340_v1 = vld [vmem:[#allocation5 + $0xb0] sm:$0xff] }
 0x123   :  { %734 = vmatprep.subr.bf16.mxu1 %v839_v0  ;;  %v741_v28 = vpack.c.bf16 %v341_v27, %v340_v1 }
 0x126   :  { %736 = vmatpush3.bf16.msra.mxu1 %v735_v23 }
 0x127   :  { %737 = vmatprep.subr.bf16.mxu1 %v839_v0 }
 0x12a   :  { %739 = vmatpush3.bf16.msra.mxu1 %v738_v26 }
 0x12b   :  { %740 = vmatprep.subr.bf16.mxu1 %v839_v0 }
 0x12e   :  { %742 = vmatpush3.bf16.msra.mxu1 %v741_v28 }
 0x12f   :  { %743 = vmatprep.subr.bf16.mxu1 %v839_v0 }
 0x132   :  { %745 = vmatpush3.bf16.msra.mxu1 %v744_v31 }
 0x133   :  { %746 = vmatprep.subr.bf16.mxu1 %v839_v0 }
 0x136   :  { %748 = vmatpush3.bf16.msra.mxu1 %v747_v34 }
 0x137   :  { %749 = vmatprep.subr.bf16.mxu1 %v839_v0 }
 0x13a   :  { %751 = vmatpush3.bf16.msra.mxu1 %v750_v37 }
 0x13b   :  { %752 = vmatprep.subr.bf16.mxu1 %v839_v0 }
 0x13e   :  { %754 = vmatpush3.bf16.msra.mxu1 %v753_v44 }
 0x1f4   :  { %v235_v39 = vpop.f32.mrb[0].mxu1 }
 0x1f5   :  { %v236_v40 = vadd.f32 %v447_v38, %v235_v39  ;;  %v588_v41 = vpop.f32.mrb[1].mxu1 }
 0x1f7   :  { %622 = vmatmul.mubr.f32.vlgmr.msra.gmra.mrb[2].mxu0 %v236_v40 }
 0x2ca   :  { %v328_v46 = vpop.f32.mrb[2].mxu0 }
 0x2cb   :  { %v329_v47 = vadd.f32 %v448_v45, %v328_v46  ;;  %v623_v48 = vpop.f32.mrb[3].mxu0 }
 0x2cd   :  { %v332_v0 = vmax.f32 %v329_v47, 0.0 }
 0x2cf   :  { %657 = vmatmul.mubr.f32.vlgmr.msra.gmra.mrb[2].mxu1 %v332_v0 }
 0x3a2   :  { %v424_v50 = vpop.f32.mrb[2].mxu1 }
 0x3a3   :  { %v425_v51 = vadd.f32 %v450_v49, %v424_v50  ;;  %v658_v52 = vpop.f32.mrb[3].mxu1 }
 0x3a5   :  { %428 = vst [vmem:[#allocation7] sm:$0xff] %v425_v51 }
 0x3a6   :  { %818 = shalt.err (!%p815_p6)
}
 0x3a7   :  { %s819_s30 = scalar_lea.hbm %s969_s5, 128 }
 0x3a8   :  { %p820_p7 = scmp.ne.s32.totalorder %s969_s5, %s819_s30  ;;  %p823_p8 = scmp.lt.u32.totalorder %s819_s30, %s969_s5 }
 0x3aa   :  { %p825_p9 = pnand %p823_p8, %p820_p7 }
 0x3ac   :  { %828 = shalt.err (!%p825_p9)
}
 0x3ad   :  { %438 = dma.vmem_to_hbm [thread:$0]  %s436_s26, 128, %s969_s5, [#allocation4]  }
 0x3ae   :  { %833 = dma.done.wait [#allocation4], 128  }
 0x3af   :  { %834 = vsyncadd [#allocation4], 4294967168 }
 0x3b0   :  { %442 = vsyncpa [#allocation3], 1 }
 0x3b1   :  { %443 = vsyncpa [#allocation6], 1 }
 0x3b2   :  { %444 = vsyncpa [#allocation4], 1 }

</bundles_post_ra>
